<compile_context>
chip_gen: v6e
topology: v6e:2x2x1
jax: 0.10.0
libtpu: 0.0.40
codegen_flags: <defaults>
</compile_context>

<pallas_src>
import jax
import jax.numpy as jnp
from jax.experimental import pallas as pl
from jax.experimental.pallas import tpu as pltpu

N = 16      # number of graph nodes (small synthetic graph)
F_IN = 8    # training_set.num_node_features (synthetic)
H1 = 40     # conv1 output features
H2 = 24     # conv2 output features


def _gsgnet_kernel(a_ref, x_ref, w1_ref, b1_ref, w2_ref, b2_ref, o_ref):
    """Fused 2-layer GraphSAGE forward on a single whole-graph block.

    a_ref:  (N, N)       mean-aggregation matrix
    x_ref:  (N, F_IN)    node features
    w1_ref: (F_IN, 2*H1) [W1_l | W1_r] merged conv1 weights
    b1_ref: (1, H1)      conv1 bias
    w2_ref: (H1, 2*H2)   [W2_l | W2_r] merged conv2 weights
    b2_ref: (1, H2)      conv2 bias
    o_ref:  (N, H2)      log-softmax output
    """
    h1 = b1_ref.shape[1]
    h2 = b2_ref.shape[1]
    a = a_ref[...]
    x = x_ref[...]

    # ---- conv1: SAGEConv(F_IN -> H1), merged projection ----------------------
    # xw1[:, :H1] = x @ W1_l (to be aggregated), xw1[:, H1:] = x @ W1_r (self term)
    xw1 = jnp.dot(x, w1_ref[...], preferred_element_type=jnp.float32)      # (N, 2*H1)
    h = (jnp.dot(a, xw1[:, :h1], preferred_element_type=jnp.float32)       # A @ (x W1_l)
         + xw1[:, h1:] + b1_ref[...])
    h = jnp.maximum(h, 0.0)                                                # ReLU
    # TODO(synk): F.dropout(p=0.5, training=self.training) is identity in eval mode
    # (training=False), which is what is implemented here.

    # ---- conv2: SAGEConv(H1 -> H2), merged projection ------------------------
    hw2 = jnp.dot(h, w2_ref[...], preferred_element_type=jnp.float32)      # (N, 2*H2)
    out = (jnp.dot(a, hw2[:, :h2], preferred_element_type=jnp.float32)     # A @ (h W2_l)
           + hw2[:, h2:] + b2_ref[...])

    # ---- log_softmax(dim=1) ---------------------------------------------------
    m = jnp.max(out, axis=1, keepdims=True)
    lse = m + jnp.log(jnp.sum(jnp.exp(out - m), axis=1, keepdims=True))
    o_ref[...] = out - lse


def gsgnet_forward(params, x, a):
    n = x.shape[0]
    h2 = params["b2"].shape[1]
    # Merge [W_l | W_r] per layer once on the host side (free; halves MXU pushes).
    w1 = jnp.concatenate([params["w1_l"], params["w1_r"]], axis=1)   # (F_IN, 2*H1)
    w2 = jnp.concatenate([params["w2_l"], params["w2_r"]], axis=1)   # (H1, 2*H2)

    vmem = pl.BlockSpec(memory_space=pltpu.MemorySpace.VMEM)         # whole-array block
    return pl.pallas_call(
        _gsgnet_kernel,
        out_shape=jax.ShapeDtypeStruct((n, h2), jnp.float32),
        in_specs=[vmem, vmem, vmem, vmem, vmem, vmem],
        out_specs=vmem,
    )(a, x, w1, params["b1"], w2, params["b2"])


def build_mean_adj(edge_index, num_nodes):
    """Dense mean-aggregation matrix A[t, s] = 1/deg_in(t) for each edge s -> t."""
    # TODO(synk): at realistic graph sizes this dense O(N^2) build should be replaced
    # by a sparse gather/segment-sum kernel; dense is exact and cheap at N=16.
    src = edge_index[0]
    dst = edge_index[1]
    a = jnp.zeros((num_nodes, num_nodes), jnp.float32).at[dst, src].add(1.0)
    deg = jnp.sum(a, axis=1, keepdims=True)
    return a / jnp.maximum(deg, 1.0)  # zero in-degree rows stay all-zero (mean = 0)


def _reference_forward(params, x, a):
    """Pure-JAX reference for correctness sanity check."""
    agg1 = a @ x
    h = agg1 @ params["w1_l"] + x @ params["w1_r"] + params["b1"]
    h = jnp.maximum(h, 0.0)
    agg2 = a @ h
    o = agg2 @ params["w2_l"] + h @ params["w2_r"] + params["b2"]
    return jax.nn.log_softmax(o, axis=1)


def init_params(key):
    k1, k2, k3, k4 = jax.random.split(key, 4)
    s1 = 1.0 / jnp.sqrt(F_IN)
    s2 = 1.0 / jnp.sqrt(H1)
    return {
        "w1_l": jax.random.normal(k1, (F_IN, H1), jnp.float32) * s1,
        "w1_r": jax.random.normal(k2, (F_IN, H1), jnp.float32) * s1,
        "b1": jnp.zeros((1, H1), jnp.float32),
        "w2_l": jax.random.normal(k3, (H1, H2), jnp.float32) * s2,
        "w2_r": jax.random.normal(k4, (H1, H2), jnp.float32) * s2,
        "b2": jnp.zeros((1, H2), jnp.float32),
    }


if __name__ == "__main__":
    key = jax.random.PRNGKey(0)
    kx, ke_src, ke_dst, kp = jax.random.split(key, 4)

    # Synthetic graph data (Data.x / Data.edge_index).
    x = jax.random.normal(kx, (N, F_IN), jnp.float32)
    E = 48
    src = jax.random.randint(ke_src, (E,), 0, N, jnp.int32)
    dst = jax.random.randint(ke_dst, (E,), 0, N, jnp.int32)
    edge_index = jnp.stack([src, dst], axis=0)  # [2, E], row0=source, row1=target

    a = build_mean_adj(edge_index, N)
    params = init_params(kp)

    out = jax.block_until_ready(gsgnet_forward(params, x, a))

    ref = _reference_forward(params, x, a)
    assert out.shape == (N, H2)
    assert jnp.allclose(out, ref, atol=1e-4, rtol=1e-4)

    print("KERNEL_OK")
</pallas_src>

<mosaic_0001>
module attributes {stable_mosaic.version = 11 : i64} {
  func.func @_gsgnet_kernel(%arg0: memref<16x16xf32, #tpu.memory_space<vmem>>, %arg1: memref<16x8xf32, #tpu.memory_space<vmem>>, %arg2: memref<8x80xf32, #tpu.memory_space<vmem>>, %arg3: memref<1x40xf32, #tpu.memory_space<vmem>>, %arg4: memref<40x48xf32, #tpu.memory_space<vmem>>, %arg5: memref<1x24xf32, #tpu.memory_space<vmem>>, %arg6: memref<16x24xf32, #tpu.memory_space<vmem>>) attributes {dimension_semantics = [], scalar_prefetch = 0 : i64, scratch_operands = 0 : i64, tpu.core_type = #tpu.core_type<tc>} {
    %c0 = arith.constant 0 : index
    %c0_0 = arith.constant 0 : index
    %0 = vector.load %arg0[%c0, %c0_0] : memref<16x16xf32, #tpu.memory_space<vmem>>, vector<16x16xf32>
    %c0_1 = arith.constant 0 : index
    %c0_2 = arith.constant 0 : index
    %1 = vector.load %arg1[%c0_1, %c0_2] : memref<16x8xf32, #tpu.memory_space<vmem>>, vector<16x8xf32>
    %c0_3 = arith.constant 0 : index
    %c0_4 = arith.constant 0 : index
    %2 = vector.load %arg2[%c0_3, %c0_4] : memref<8x80xf32, #tpu.memory_space<vmem>>, vector<8x80xf32>
    %cst = arith.constant dense<0.000000e+00> : vector<16x80xf32>
    %3 = tpu.matmul %1, %2, %cst {dimension_numbers = #tpu.dot_dimension_numbers<[1], [0], [0], [1], [0, 0, 1, 1], [], []>} : vector<16x8xf32>, vector<8x80xf32>, vector<16x80xf32> -> vector<16x80xf32>
    %4 = vector.extract_strided_slice %3 {offsets = [0, 0], sizes = [16, 40], strides = [1, 1]} : vector<16x80xf32> to vector<16x40xf32>
    %cst_5 = arith.constant dense<0.000000e+00> : vector<16x40xf32>
    %5 = tpu.matmul %0, %4, %cst_5 {dimension_numbers = #tpu.dot_dimension_numbers<[1], [0], [0], [1], [0, 0, 1, 1], [], []>} : vector<16x16xf32>, vector<16x40xf32>, vector<16x40xf32> -> vector<16x40xf32>
    %6 = vector.extract_strided_slice %3 {offsets = [0, 40], sizes = [16, 40], strides = [1, 1]} : vector<16x80xf32> to vector<16x40xf32>
    %7 = arith.addf %5, %6 : vector<16x40xf32>
    %c0_6 = arith.constant 0 : index
    %c0_7 = arith.constant 0 : index
    %8 = vector.load %arg3[%c0_6, %c0_7] : memref<1x40xf32, #tpu.memory_space<vmem>>, vector<1x40xf32>
    %9 = vector.broadcast %8 : vector<1x40xf32> to vector<16x40xf32>
    %10 = arith.addf %7, %9 : vector<16x40xf32>
    %cst_8 = arith.constant 0.000000e+00 : f32
    %11 = vector.broadcast %cst_8 : f32 to vector<16x40xf32>
    %12 = arith.maximumf %10, %11 : vector<16x40xf32>
    %c0_9 = arith.constant 0 : index
    %c0_10 = arith.constant 0 : index
    %13 = vector.load %arg4[%c0_9, %c0_10] : memref<40x48xf32, #tpu.memory_space<vmem>>, vector<40x48xf32>
    %cst_11 = arith.constant dense<0.000000e+00> : vector<16x48xf32>
    %14 = tpu.matmul %12, %13, %cst_11 {dimension_numbers = #tpu.dot_dimension_numbers<[1], [0], [0], [1], [0, 0, 1, 1], [], []>} : vector<16x40xf32>, vector<40x48xf32>, vector<16x48xf32> -> vector<16x48xf32>
    %15 = vector.extract_strided_slice %14 {offsets = [0, 0], sizes = [16, 24], strides = [1, 1]} : vector<16x48xf32> to vector<16x24xf32>
    %cst_12 = arith.constant dense<0.000000e+00> : vector<16x24xf32>
    %16 = tpu.matmul %0, %15, %cst_12 {dimension_numbers = #tpu.dot_dimension_numbers<[1], [0], [0], [1], [0, 0, 1, 1], [], []>} : vector<16x16xf32>, vector<16x24xf32>, vector<16x24xf32> -> vector<16x24xf32>
    %17 = vector.extract_strided_slice %14 {offsets = [0, 24], sizes = [16, 24], strides = [1, 1]} : vector<16x48xf32> to vector<16x24xf32>
    %18 = arith.addf %16, %17 : vector<16x24xf32>
    %c0_13 = arith.constant 0 : index
    %c0_14 = arith.constant 0 : index
    %19 = vector.load %arg5[%c0_13, %c0_14] : memref<1x24xf32, #tpu.memory_space<vmem>>, vector<1x24xf32>
    %20 = vector.broadcast %19 : vector<1x24xf32> to vector<16x24xf32>
    %21 = arith.addf %18, %20 : vector<16x24xf32>
    %cst_15 = arith.constant dense<0xFF800000> : vector<16xf32>
    %22 = vector.multi_reduction <maximumf>, %21, %cst_15 [1] : vector<16x24xf32> to vector<16xf32>
    %23 = vector.shape_cast %22 : vector<16xf32> to vector<16x1xf32>
    %24 = vector.broadcast %23 : vector<16x1xf32> to vector<16x24xf32>
    %25 = arith.subf %21, %24 : vector<16x24xf32>
    %26 = math.exp %25 : vector<16x24xf32>
    %cst_16 = arith.constant dense<0.000000e+00> : vector<16xf32>
    %27 = vector.multi_reduction <add>, %26, %cst_16 [1] : vector<16x24xf32> to vector<16xf32>
    %28 = vector.shape_cast %27 : vector<16xf32> to vector<16x1xf32>
    %29 = math.log %28 : vector<16x1xf32>
    %30 = arith.addf %23, %29 : vector<16x1xf32>
    %31 = vector.broadcast %30 : vector<16x1xf32> to vector<16x24xf32>
    %32 = arith.subf %21, %31 : vector<16x24xf32>
    %c0_17 = arith.constant 0 : index
    %c0_18 = arith.constant 0 : index
    %33 = vector.load %arg6[%c0_17, %c0_18] : memref<16x24xf32, #tpu.memory_space<vmem>>, vector<16x24xf32>
    tpu.vector_store %arg6[%c0_17, %c0_18], %32 {strides = array<i32>} : memref<16x24xf32, #tpu.memory_space<vmem>>, vector<16x24xf32>,
    return
  }
}

</mosaic_0001>

<bundles_post_ra>
// kernel: tpu_custom_call.1
= control target key start
LH: loop header
LB: loop body
LE: loop exit
PB: predicated region body
PF: predicated region fallthrough
CT: control target
= control target key end

     0   :  { %11 = vsyncpa [#allocation3], 0  ;;  %s653_s0 = inlined_call_operand.vmem [shape: f32[16,16], index: 0, kind: input, shape index: {}]   ;;  %s654_s1 = inlined_call_operand.vmem [shape: f32[16,8], index: 1, kind: input, shape index: {}]   ;;  %s655_s2 = inlined_call_operand.vmem [shape: f32[8,80], index: 2, kind: input, shape index: {}]   ;;  %s656_s3 = inlined_call_operand.vmem [shape: f32[1,40], index: 3, kind: input, shape index: {}]   ;;  %s657_s4 = inlined_call_operand.hbm [shape: f32[40,48], index: 4, kind: input, shape index: {}]   ;;  %s658_s5 = inlined_call_operand.vmem [shape: f32[1,24], index: 5, kind: input, shape index: {}]   ;;  %s659_s6 = inlined_call_operand.hbm [shape: f32[16,24], index: 6, kind: output, shape index: {}]  }
   0x1   :  { %12 = vsyncpa [#allocation4], 0  ;;  %s569_s21 = smov [#allocation2]  }
   0x2   :  { %s26_s22 = sshll.u32 %s569_s21, 4  ;;  %s27_s22 = int_to_ptr.vmem [resolvable:$true] %s26_s22 }
   0x3   :  { %s533_s23 = scalar_lea.vmem %s27_s22, 640  ;;  %p538_p1 = scmp.lt.s32.totalorder %s27_s22, %s27_s22 }
   0x4   :  { %p534_p0 = scmp.ne.s32.totalorder %s27_s22, %s533_s23  ;;  %p539_p2 = scmp.lt.s32.totalorder %s533_s23, %s533_s23 }
   0x6   :  { %p540_p3 = por %p539_p2, %p538_p1 }
   0x8   :  { %p541_p4 = pnand %p540_p3, %p534_p0 }
   0xa   :  { %544 = shalt.err (!%p541_p4)
}
   0xb   :  { %s570_s24 = smov 128   ;;  %s571_s25 = smov 8  }
   0xc   :  { %32 = dma.hbm_to_vmem [thread:$0]  %s657_s4, 640, %s27_s22, [#allocation3], %s570_s24, %s570_s24, %s571_s25  }
   0xd   :  { %565 = dma.done.wait [#allocation3], 640  }
   0xe   :  { %566 = vsyncadd [#allocation3], 4294966656  ;;  %vm43_vm0 = vcmask 64512   ;;  %v42_v0 = vld [vmem:[%s655_s2] sm:$0xff]  ;;  %v41_v2 = vld [vmem:[%s654_s1 + $0x8] sm:$0xff]  ;;  %vm133_vm1 = vcmask 130048  }
   0xf   :  { %v40_v1 = vld [vmem:[%s654_s1] sm:$0xff]  ;;  %479 = vmatprep.subr.mxu1 %v42_v0  ;;  %v39_v6 = vld [vmem:[%s653_s0 + $0x8] sm:$0xff]  ;;  %s572_s1 = smov 88   ;;  %v229_v8 = vld [vmem:[#allocation2 + $0x18] sm:$0xff]  ;;  %vm231_vm2 = vcmask 326656   ;;  %s573_s13 = smov 104  }
  0x10   :  { %481 = vmatprep.mubr.msk.f32.mxu1 %vm43_vm0, %v40_v1  ;;  %480 = vmatpush3.msra.mxu1 %v42_v0  ;;  %v38_v3 = vld [vmem:[%s653_s0] sm:$0xff]  ;;  %v228_v9 = vld [vmem:[#allocation2 + $0x10] sm:$0xff]  ;;  %v227_v10 = vld [vmem:[#allocation2 + $0x8] sm:$0xff]  ;;  %vm405_vm3 = vcmask 195584  }
  0x11   :  { %482 = vmatmul.mubr.msk.f32.vlgmr.msra.gmra.mxu1 %vm43_vm0, %v41_v2  ;;  %v230_v7 = vld [vmem:[#allocation2 + $0x20] sm:$0xff] }
  0x12   :  { %488 = vmatprep.mubr.msk.f32.mxu1 %vm133_vm1, %v38_v3  ;;  %491 = vmatprep.subr.mxu0 %v230_v7  ;;  %v226_v11 = vld [vmem:[#allocation2] sm:$0xff] }
  0x13   :  { %492 = vmatpush3.msra.mxu0 %v230_v7  ;;  %v455_v16 = vld [vmem:[%s656_s3] ss:$0 sm:$0xff] }
  0x14   :  { %493 = vmatprep.subr.mxu0 %v229_v8  ;;  %v460_v28 = vld [vmem:[%s658_s5] ss:$0 sm:$0xff]  ;;  %s574_s5 = smov [#allocation5]  }
  0x15   :  { %494 = vmatpush3.msra.mxu0 %v229_v8  ;;  %s439_s15 = sshll.u32 %s574_s5, 4  ;;  %s440_s15 = int_to_ptr.vmem [resolvable:$true] %s439_s15 }
  0x16   :  { %495 = vmatprep.subr.mxu0 %v228_v9  ;;  %s545_s16 = scalar_lea.vmem %s440_s15, 256  ;;  %p550_p6 = scmp.lt.s32.totalorder %s440_s15, %s440_s15 }
  0x17   :  { %496 = vmatpush3.msra.mxu0 %v228_v9  ;;  %p546_p5 = scmp.ne.s32.totalorder %s440_s15, %s545_s16  ;;  %p551_p7 = scmp.lt.s32.totalorder %s545_s16, %s545_s16 }
  0x18   :  { %497 = vmatprep.subr.mxu0 %v227_v10 }
  0x19   :  { %498 = vmatpush3.msra.mxu0 %v227_v10  ;;  %p552_p8 = por %p551_p7, %p550_p6 }
  0x1a   :  { %499 = vmatprep.subr.mxu0 %v226_v11 }
  0x1b   :  { %500 = vmatpush3.msra.mxu0 %v226_v11  ;;  %p553_p9 = pnand %p552_p8, %p546_p5 }
  0xd1   :  { %v483_v4 = vpop.f32.mrf.mxu1 }
  0xd2   :  { %484 = vmatprep.subr.mxu1 %v483_v4 }
  0xd3   :  { %v116_v5 = vpop.f32.mrf.mxu1  ;;  %485 = vmatpush3.msra.mxu1 %v483_v4 }
  0xd4   :  { %127 = vrot.lane.b32.xlu0 %v116_v5, %s572_s1  ;;  %486 = vmatprep.subr.mxu1 %v116_v5 }
  0xd5   :  { %487 = vmatpush3.msra.mxu1 %v116_v5 }
  0xd6   :  { %489 = vmatmul.mubr.msk.f32.vlgmr.msra.gmra.mxu1 %vm133_vm1, %v39_v6 }
  0xd7   :  { %508 = vmatprep.mubr.msk.f32.mxu1 %vm133_vm1, %v38_v3 }
  0xd8   :  { %129 = vrot.lane.b32.xlu0 %v483_v4, %s572_s1 }
 0x146   :  { %v128_v12 = vpop.permute.xlu0 %127 }
 0x14a   :  { %v130_v13 = vpop.permute.xlu0 %129 }
 0x196   :  { %v490_v14 = vpop.f32.mrf.mxu1 }
 0x197   :  { %v212_v15 = vadd.f32 %v490_v14, %v130_v13 }
 0x198   :  { %v206_v17 = vpop.f32.mrf.mxu1 }
 0x199   :  { %v207_v18 = vadd.f32 %v206_v17, %v128_v12  ;;  %v223_v19 = vadd.f32 %v455_v16, %v212_v15 }
 0x19b   :  { %v222_v20 = vadd.f32 %v455_v16, %v207_v18  ;;  %v225_v22 = vmax.f32 %v223_v19, 0.0 }
 0x19d   :  { %v224_v21 = vmax.f32 %v222_v20, 0.0 }
 0x19f   :  { %501 = vmatprep.mubr.msk.f32.mxu0 %vm231_vm2, %v224_v21 }
 0x1a0   :  { %502 = vmatmul.mubr.msk.f32.vlgmr.msra.gmra.mxu0 %vm231_vm2, %v225_v22 }
 0x260   :  { %v503_v23 = vpop.f32.mrf.mxu0 }
 0x261   :  { %504 = vmatprep.subr.mxu1 %v503_v23 }
 0x262   :  { %v304_v24 = vpop.f32.mrf.mxu0  ;;  %505 = vmatpush3.msra.mxu1 %v503_v23 }
 0x263   :  { %315 = vrot.lane.b32.xlu1 %v304_v24, %s573_s13  ;;  %506 = vmatprep.subr.mxu1 %v304_v24 }
 0x264   :  { %507 = vmatpush3.msra.mxu1 %v304_v24 }
 0x265   :  { %509 = vmatmul.mubr.msk.f32.vlgmr.msra.gmra.mxu1 %vm133_vm1, %v39_v6 }
 0x267   :  { %317 = vrot.lane.b32.xlu1 %v503_v23, %s573_s13 }
 0x2d5   :  { %v316_v25 = vpop.permute.xlu1 %315 }
 0x2d9   :  { %v318_v26 = vpop.permute.xlu1 %317 }
 0x325   :  { %v510_v27 = vpop.f32.mrf.mxu1 }
 0x326   :  { %v393_v29 = vadd.f32 %v510_v27, %v318_v26 }
 0x327   :  { %v387_v30 = vpop.f32.mrf.mxu1 }
 0x328   :  { %v404_v31 = vadd.f32 %v460_v28, %v393_v29  ;;  %v388_v32 = vadd.f32 %v387_v30, %v316_v25 }
 0x32a   :  { %v403_v33 = vadd.f32 %v460_v28, %v388_v32  ;;  %v409_v34 = vsel %vm405_vm3, %v404_v31, -inf }
 0x32b   :  { %410 = vmax.xlane.f32.xlu1 %v409_v34 }
 0x32c   :  { %v406_v35 = vsel %vm405_vm3, %v403_v33, -inf }
 0x32d   :  { %407 = vmax.xlane.f32.xlu0 %v406_v35 }
 0x3b4   :  { %v411_v36 = vpop.xlane.xlu1 %410 }
 0x3b5   :  { %v413_v37 = vsub.f32 %v404_v31, %v411_v36 }
 0x3b6   :  { %v408_v38 = vpop.xlane.xlu0 %407 }
 0x3b7   :  { %v412_v39 = vsub.f32 %v403_v33, %v408_v38  ;;  %v416_v40 = vmul.f32 1.442695, %v413_v37 }
 0x3b9   :  { %v414_v41 = vmul.f32 1.442695, %v412_v39 }
 0x3bb   :  { %517 = vpow2.f32 %v414_v41 }
 0x3bc   :  { %519 = vpow2.f32 %v416_v40 }
 0x3c8   :  { %v518_v42 = vpop.eup %517 }
 0x3c9   :  { %v418_v43 = vsel %vm405_vm3, %v518_v42, 0.0  ;;  %v520_v44 = vpop.eup %519 }
 0x3ca   :  { %419 = vadd.xlane.f32.xlu0 %v418_v43  ;;  %v421_v45 = vsel %vm405_vm3, %v520_v44, 0.0 }
 0x3ce   :  { %422 = vadd.xlane.f32.xlu0 %v421_v45 }
 0x453   :  { %v420_v46 = vpop.xlane.xlu0 %419 }
 0x454   :  { %521 = vlog2.f32 %v420_v46 }
 0x457   :  { %v423_v47 = vpop.xlane.xlu0 %422 }
 0x458   :  { %523 = vlog2.f32 %v423_v47 }
 0x461   :  { %v522_v48 = vpop.eup %521 }
 0x462   :  { %v425_v49 = vmul.f32 0.6931472, %v522_v48 }
 0x464   :  { %v428_v50 = vadd.f32 %v425_v49, %v408_v38 }
 0x465   :  { %v524_v51 = vpop.eup %523 }
 0x466   :  { %v427_v52 = vmul.f32 0.6931472, %v524_v51  ;;  %v430_v53 = vsub.f32 %v403_v33, %v428_v50 }
 0x468   :  { %v429_v54 = vadd.f32 %v427_v52, %v411_v36  ;;  %432 = vst.msk [vmem:[#allocation5] sm:$0xff] %vm405_vm3, %v430_v53 }
 0x46a   :  { %v431_v55 = vsub.f32 %v404_v31, %v429_v54 }
 0x46c   :  { %433 = vst.msk [vmem:[#allocation5 + $0x8] sm:$0xff] %vm405_vm3, %v431_v55 }
 0x46d   :  { %556 = shalt.err (!%p553_p9)
}
 0x46e   :  { %445 = dma.vmem_to_hbm [thread:$0]  %s440_s15, 256, %s659_s6, [#allocation4], %s570_s24, %s570_s24, %s571_s25  }
 0x46f   :  { %567 = dma.done.wait [#allocation4], 256  }
 0x470   :  { %568 = vsyncadd [#allocation4], 4294967040 }
 0x471   :  { %449 = vsyncpa [#allocation3], 1 }
 0x472   :  { %450 = vsyncpa [#allocation4], 1 }

</bundles_post_ra>
